<compile_context>
chip_gen: v6e
topology: v6e:2x2x1
jax: 0.10.0
libtpu: 0.0.40
codegen_flags: <defaults>
</compile_context>

<pallas_src>
import functools

import jax
import jax.numpy as jnp
from jax import lax
from jax.experimental import pallas as pl
from jax.experimental.pallas import tpu as pltpu


def _round_up(x, m):
    return ((x + m - 1) // m) * m


def _mnr_loss_kernel(a_ref, p_col_ref, p_row_ref, loss_ref,
                     m_sc, l_sc, d_sc, *, scale, b_valid, tb_col, mask_cols):
    """One (row-tile, col-tile) grid step; col axis is the LSE reduction."""
    j = pl.program_id(1)

    # L2-normalize the anchor row tile (f32 math on VPU/EUP).
    a = a_ref[...].astype(jnp.float32)                                   # [TR, D]
    a_n = a * lax.rsqrt(jnp.sum(a * a, axis=-1, keepdims=True) + 1e-12)

    # Per-row-tile init + positive-pair logit (diagonal), once per row tile.
    @pl.when(j == 0)
    def _():
        m_sc[...] = jnp.full(m_sc.shape, -jnp.inf, dtype=jnp.float32)
        l_sc[...] = jnp.zeros(l_sc.shape, dtype=jnp.float32)
        pr = p_row_ref[...].astype(jnp.float32)                          # [TR, D]
        pr_n = pr * lax.rsqrt(jnp.sum(pr * pr, axis=-1, keepdims=True) + 1e-12)
        # Diagonal as a row-wise dot: no [B,B] iota / where / reduce.
        d_sc[...] = scale * jnp.sum(a_n * pr_n, axis=-1, keepdims=True)

    # L2-normalize the positive column tile.
    p = p_col_ref[...].astype(jnp.float32)                               # [TC, D]
    p_n = p * lax.rsqrt(jnp.sum(p * p, axis=-1, keepdims=True) + 1e-12)

    # MXU matmul in the input dtype with f32 accumulation; scale folded into
    # the (smaller) [TR, D] anchor operand instead of the [TR, TC] scores.
    a_mxu = (a_n * scale).astype(a_ref.dtype)
    p_mxu = p_n.astype(p_col_ref.dtype)
    scores = jnp.dot(a_mxu, p_mxu.T, preferred_element_type=jnp.float32)  # [TR, TC]

    if mask_cols:  # static: only emitted when the batch was padded
        col_ids = j * tb_col + lax.broadcasted_iota(jnp.int32, scores.shape, 1)
        scores = jnp.where(col_ids < b_valid, scores, jnp.float32(-jnp.inf))

    # Online log-sum-exp across column tiles.
    m_prev = m_sc[...]                                                   # [TR, 1]
    m_new = jnp.maximum(m_prev, jnp.max(scores, axis=-1, keepdims=True))
    l_sc[...] = (l_sc[...] * jnp.exp(m_prev - m_new)
                 + jnp.sum(jnp.exp(scores - m_new), axis=-1, keepdims=True))
    m_sc[...] = m_new

    # Finalize: per-row loss = logsumexp - positive logit.
    @pl.when(j == pl.num_programs(1) - 1)
    def _():
        lse = m_sc[...] + jnp.log(l_sc[...])
        loss_ref[...] = lse - d_sc[...]


def _pick_tiles(b):
    """Return (row_tile, col_tile, padded_batch)."""
    if b <= 256:
        t = _round_up(max(b, 8), 8)        # single tile along both axes
        return t, t, t
    # Production sizes: 256-row / 512-col score tiles (multiples of 128,
    # full MXU cadence, ~0.5 MiB f32 score slab -> fits v7x VMEM easily).
    tb_row, tb_col = 256, 512
    return tb_row, tb_col, _round_up(b, 512)


def loss_model_pallas(anchor, positive, *, scale=20.0):
    """Pallas-backed loss_model: MultipleNegativesRanking-style loss."""
    b, d = anchor.shape
    assert positive.shape == (b, d)
    tb_row, tb_col, b_pad = _pick_tiles(b)

    if b_pad != b:
        pad = b_pad - b
        anchor = jnp.pad(anchor, ((0, pad), (0, 0)))
        positive = jnp.pad(positive, ((0, pad), (0, 0)))

    grid = (b_pad // tb_row, b_pad // tb_col)

    kernel = functools.partial(
        _mnr_loss_kernel, scale=float(scale), b_valid=b, tb_col=tb_col,
        mask_cols=(b_pad != b))

    itemsize = jnp.dtype(anchor.dtype).itemsize
    cost = pl.CostEstimate(
        flops=2 * b_pad * b_pad * d + 8 * b_pad * d,
        transcendentals=b_pad * b_pad + 2 * b_pad,
        bytes_accessed=(2 + grid[0]) * b_pad * d * itemsize + 4 * b_pad)

    per_row = pl.pallas_call(
        kernel,
        out_shape=jax.ShapeDtypeStruct((b_pad, 1), jnp.float32),
        grid_spec=pltpu.PrefetchScalarGridSpec(
            num_scalar_prefetch=0,
            grid=grid,
            in_specs=[
                pl.BlockSpec((tb_row, d), lambda i, j: (i, 0)),   # anchor rows
                pl.BlockSpec((tb_col, d), lambda i, j: (j, 0)),   # positive "columns"
                pl.BlockSpec((tb_row, d), lambda i, j: (i, 0)),   # positive rows (diag)
            ],
            out_specs=pl.BlockSpec((tb_row, 1), lambda i, j: (i, 0)),
            scratch_shapes=[
                pltpu.VMEM((tb_row, 1), jnp.float32),   # running max  m
                pltpu.VMEM((tb_row, 1), jnp.float32),   # running sum  l
                pltpu.VMEM((tb_row, 1), jnp.float32),   # diagonal logits
            ],
        ),
        compiler_params=pltpu.CompilerParams(
            dimension_semantics=("parallel", "arbitrary")),
        cost_estimate=cost,
    )(anchor, positive, positive)

    # Mean over the true batch only (padded rows excluded).
    return jnp.mean(per_row[:b, 0])


def loss_with_logging(anchor, positive, *, scale=20.0):
    """Forward pass of Loss_with_logging: compute loss, (log it), return it."""
    loss = loss_model_pallas(anchor, positive, scale=scale)
    # TODO(synk): wandb.log({'loss': loss.item()}) is a host-side logging side
    # effect with no Pallas/TPU equivalent; the loss value is simply returned.
    return loss


def _reference_loss(anchor, positive, scale=20.0):
    a = anchor.astype(jnp.float32)
    p = positive.astype(jnp.float32)
    a_n = a / jnp.sqrt(jnp.sum(a * a, axis=-1, keepdims=True) + 1e-12)
    p_n = p / jnp.sqrt(jnp.sum(p * p, axis=-1, keepdims=True) + 1e-12)
    scores = scale * (a_n @ p_n.T)
    n = scores.shape[0]
    logp = jax.nn.log_softmax(scores, axis=-1)
    return -jnp.mean(logp[jnp.arange(n), jnp.arange(n)])


if __name__ == "__main__":
    key = jax.random.PRNGKey(0)
    k_a, k_p, k_a2, k_p2 = jax.random.split(key, 4)

    # Small batch of sentence embeddings (no padding path).
    B, D = 8, 32
    anchor = jax.random.normal(k_a, (B, D), dtype=jnp.float32)
    positive = anchor + 0.1 * jax.random.normal(k_p, (B, D), dtype=jnp.float32)

    loss = loss_with_logging(anchor, positive)
    loss = jax.block_until_ready(loss)
    ref = _reference_loss(anchor, positive)
    assert jnp.allclose(loss, ref, atol=1e-4, rtol=1e-4), (loss, ref)

    # Non-multiple-of-8 batch exercises the padded-column masking path.
    B2 = 20
    anchor2 = jax.random.normal(k_a2, (B2, D), dtype=jnp.float32)
    positive2 = anchor2 + 0.1 * jax.random.normal(k_p2, (B2, D), dtype=jnp.float32)
    loss2 = jax.block_until_ready(loss_with_logging(anchor2, positive2))
    ref2 = _reference_loss(anchor2, positive2)
    assert jnp.allclose(loss2, ref2, atol=1e-4, rtol=1e-4), (loss2, ref2)

    print("KERNEL_OK")
</pallas_src>

<mosaic_0001>
module attributes {stable_mosaic.version = 11 : i64} {
  func.func @_mnr_loss_kernel(%arg0: i32, %arg1: i32, %arg2: memref<8x32xf32, #tpu.memory_space<vmem>>, %arg3: memref<8x32xf32, #tpu.memory_space<vmem>>, %arg4: memref<8x32xf32, #tpu.memory_space<vmem>>, %arg5: memref<8x1xf32, #tpu.memory_space<vmem>>, %arg6: memref<8x1xf32, #tpu.memory_space<vmem>>, %arg7: memref<8x1xf32, #tpu.memory_space<vmem>>, %arg8: memref<8x1xf32, #tpu.memory_space<vmem>>) attributes {dimension_semantics = [#tpu.dimension_semantics<parallel>, #tpu.dimension_semantics<arbitrary>], iteration_bounds = array<i64: 1, 1>, scalar_prefetch = 0 : i64, scratch_operands = 3 : i64, tpu.core_type = #tpu.core_type<tc>, window_params = [{transform_indices = @transform_0, window_bounds = array<i64: 8, 32>}, {transform_indices = @transform_1, window_bounds = array<i64: 8, 32>}, {transform_indices = @transform_2, window_bounds = array<i64: 8, 32>}, {transform_indices = @transform_3, window_bounds = array<i64: 8, 1>}]} {
    %c0 = arith.constant 0 : index
    %c0_0 = arith.constant 0 : index
    %0 = vector.load %arg2[%c0, %c0_0] : memref<8x32xf32, #tpu.memory_space<vmem>>, vector<8x32xf32>
    %1 = arith.mulf %0, %0 : vector<8x32xf32>
    %cst = arith.constant dense<0.000000e+00> : vector<8xf32>
    %2 = vector.multi_reduction <add>, %1, %cst [1] : vector<8x32xf32> to vector<8xf32>
    %3 = vector.shape_cast %2 : vector<8xf32> to vector<8x1xf32>
    %cst_1 = arith.constant 9.99999996E-13 : f32
    %4 = vector.broadcast %cst_1 : f32 to vector<8x1xf32>
    %5 = arith.addf %3, %4 : vector<8x1xf32>
    %6 = math.rsqrt %5 : vector<8x1xf32>
    %7 = vector.broadcast %6 : vector<8x1xf32> to vector<8x32xf32>
    %8 = arith.mulf %0, %7 : vector<8x32xf32>
    %c0_i32 = arith.constant 0 : i32
    %9 = arith.cmpi eq, %arg1, %c0_i32 : i32
    %10 = arith.extui %9 : i1 to i32
    %c0_i32_2 = arith.constant 0 : i32
    %11 = arith.cmpi ne, %10, %c0_i32_2 : i32
    scf.if %11 {
      %cst_21 = arith.constant 0xFF800000 : f32
      %44 = vector.broadcast %cst_21 : f32 to vector<8x1xf32>
      %c0_22 = arith.constant 0 : index
      %c0_23 = arith.constant 0 : index
      %45 = vector.load %arg6[%c0_22, %c0_23] : memref<8x1xf32, #tpu.memory_space<vmem>>, vector<8x1xf32>
      tpu.vector_store %arg6[%c0_22, %c0_23], %44 {strides = array<i32>} : memref<8x1xf32, #tpu.memory_space<vmem>>, vector<8x1xf32>,
      %cst_24 = arith.constant 0.000000e+00 : f32
      %46 = vector.broadcast %cst_24 : f32 to vector<8x1xf32>
      %c0_25 = arith.constant 0 : index
      %c0_26 = arith.constant 0 : index
      %47 = vector.load %arg7[%c0_25, %c0_26] : memref<8x1xf32, #tpu.memory_space<vmem>>, vector<8x1xf32>
      tpu.vector_store %arg7[%c0_25, %c0_26], %46 {strides = array<i32>} : memref<8x1xf32, #tpu.memory_space<vmem>>, vector<8x1xf32>,
      %c0_27 = arith.constant 0 : index
      %c0_28 = arith.constant 0 : index
      %48 = vector.load %arg4[%c0_27, %c0_28] : memref<8x32xf32, #tpu.memory_space<vmem>>, vector<8x32xf32>
      %49 = arith.mulf %48, %48 : vector<8x32xf32>
      %cst_29 = arith.constant dense<0.000000e+00> : vector<8xf32>
      %50 = vector.multi_reduction <add>, %49, %cst_29 [1] : vector<8x32xf32> to vector<8xf32>
      %51 = vector.shape_cast %50 : vector<8xf32> to vector<8x1xf32>
      %cst_30 = arith.constant 9.99999996E-13 : f32
      %52 = vector.broadcast %cst_30 : f32 to vector<8x1xf32>
      %53 = arith.addf %51, %52 : vector<8x1xf32>
      %54 = math.rsqrt %53 : vector<8x1xf32>
      %55 = vector.broadcast %54 : vector<8x1xf32> to vector<8x32xf32>
      %56 = arith.mulf %48, %55 : vector<8x32xf32>
      %57 = arith.mulf %8, %56 : vector<8x32xf32>
      %cst_31 = arith.constant dense<0.000000e+00> : vector<8xf32>
      %58 = vector.multi_reduction <add>, %57, %cst_31 [1] : vector<8x32xf32> to vector<8xf32>
      %59 = vector.shape_cast %58 : vector<8xf32> to vector<8x1xf32>
      %cst_32 = arith.constant 2.000000e+01 : f32
      %60 = vector.broadcast %cst_32 : f32 to vector<8x1xf32>
      %61 = arith.mulf %60, %59 : vector<8x1xf32>
      %c0_33 = arith.constant 0 : index
      %c0_34 = arith.constant 0 : index
      %62 = vector.load %arg8[%c0_33, %c0_34] : memref<8x1xf32, #tpu.memory_space<vmem>>, vector<8x1xf32>
      tpu.vector_store %arg8[%c0_33, %c0_34], %61 {strides = array<i32>} : memref<8x1xf32, #tpu.memory_space<vmem>>, vector<8x1xf32>,
    } else {
    }
    %c0_3 = arith.constant 0 : index
    %c0_4 = arith.constant 0 : index
    %12 = vector.load %arg3[%c0_3, %c0_4] : memref<8x32xf32, #tpu.memory_space<vmem>>, vector<8x32xf32>
    %13 = arith.mulf %12, %12 : vector<8x32xf32>
    %cst_5 = arith.constant dense<0.000000e+00> : vector<8xf32>
    %14 = vector.multi_reduction <add>, %13, %cst_5 [1] : vector<8x32xf32> to vector<8xf32>
    %15 = vector.shape_cast %14 : vector<8xf32> to vector<8x1xf32>
    %cst_6 = arith.constant 9.99999996E-13 : f32
    %16 = vector.broadcast %cst_6 : f32 to vector<8x1xf32>
    %17 = arith.addf %15, %16 : vector<8x1xf32>
    %18 = math.rsqrt %17 : vector<8x1xf32>
    %19 = vector.broadcast %18 : vector<8x1xf32> to vector<8x32xf32>
    %20 = arith.mulf %12, %19 : vector<8x32xf32>
    %cst_7 = arith.constant 2.000000e+01 : f32
    %21 = vector.broadcast %cst_7 : f32 to vector<8x32xf32>
    %22 = arith.mulf %8, %21 : vector<8x32xf32>
    %23 = tpu.transpose %20, [1, 0] : vector<8x32xf32> -> vector<32x8xf32>
    %cst_8 = arith.constant dense<0.000000e+00> : vector<8x8xf32>
    %24 = tpu.matmul %22, %23, %cst_8 {dimension_numbers = #tpu.dot_dimension_numbers<[1], [0], [0], [1], [0, 0, 1, 1], [], []>} : vector<8x32xf32>, vector<32x8xf32>, vector<8x8xf32> -> vector<8x8xf32>
    %c0_9 = arith.constant 0 : index
    %c0_10 = arith.constant 0 : index
    %25 = vector.load %arg6[%c0_9, %c0_10] : memref<8x1xf32, #tpu.memory_space<vmem>>, vector<8x1xf32>
    %cst_11 = arith.constant dense<0xFF800000> : vector<8xf32>
    %26 = vector.multi_reduction <maximumf>, %24, %cst_11 [1] : vector<8x8xf32> to vector<8xf32>
    %27 = vector.shape_cast %26 : vector<8xf32> to vector<8x1xf32>
    %28 = arith.maximumf %25, %27 : vector<8x1xf32>
    %c0_12 = arith.constant 0 : index
    %c0_13 = arith.constant 0 : index
    %29 = vector.load %arg7[%c0_12, %c0_13] : memref<8x1xf32, #tpu.memory_space<vmem>>, vector<8x1xf32>
    %30 = arith.subf %25, %28 : vector<8x1xf32>
    %31 = math.exp %30 : vector<8x1xf32>
    %32 = arith.mulf %29, %31 : vector<8x1xf32>
    %33 = vector.broadcast %28 : vector<8x1xf32> to vector<8x8xf32>
    %34 = arith.subf %24, %33 : vector<8x8xf32>
    %35 = math.exp %34 : vector<8x8xf32>
    %cst_14 = arith.constant dense<0.000000e+00> : vector<8xf32>
    %36 = vector.multi_reduction <add>, %35, %cst_14 [1] : vector<8x8xf32> to vector<8xf32>
    %37 = vector.shape_cast %36 : vector<8xf32> to vector<8x1xf32>
    %38 = arith.addf %32, %37 : vector<8x1xf32>
    %c0_15 = arith.constant 0 : index
    %c0_16 = arith.constant 0 : index
    %39 = vector.load %arg7[%c0_15, %c0_16] : memref<8x1xf32, #tpu.memory_space<vmem>>, vector<8x1xf32>
    tpu.vector_store %arg7[%c0_15, %c0_16], %38 {strides = array<i32>} : memref<8x1xf32, #tpu.memory_space<vmem>>, vector<8x1xf32>,
    %c0_17 = arith.constant 0 : index
    %c0_18 = arith.constant 0 : index
    %40 = vector.load %arg6[%c0_17, %c0_18] : memref<8x1xf32, #tpu.memory_space<vmem>>, vector<8x1xf32>
    tpu.vector_store %arg6[%c0_17, %c0_18], %28 {strides = array<i32>} : memref<8x1xf32, #tpu.memory_space<vmem>>, vector<8x1xf32>,
    %c0_i32_19 = arith.constant 0 : i32
    %41 = arith.cmpi eq, %arg1, %c0_i32_19 : i32
    %42 = arith.extui %41 : i1 to i32
    %c0_i32_20 = arith.constant 0 : i32
    %43 = arith.cmpi ne, %42, %c0_i32_20 : i32
    scf.if %43 {
      %c0_21 = arith.constant 0 : index
      %c0_22 = arith.constant 0 : index
      %44 = vector.load %arg6[%c0_21, %c0_22] : memref<8x1xf32, #tpu.memory_space<vmem>>, vector<8x1xf32>
      %c0_23 = arith.constant 0 : index
      %c0_24 = arith.constant 0 : index
      %45 = vector.load %arg7[%c0_23, %c0_24] : memref<8x1xf32, #tpu.memory_space<vmem>>, vector<8x1xf32>
      %46 = math.log %45 : vector<8x1xf32>
      %47 = arith.addf %44, %46 : vector<8x1xf32>
      %c0_25 = arith.constant 0 : index
      %c0_26 = arith.constant 0 : index
      %48 = vector.load %arg8[%c0_25, %c0_26] : memref<8x1xf32, #tpu.memory_space<vmem>>, vector<8x1xf32>
      %49 = arith.subf %47, %48 : vector<8x1xf32>
      %c0_27 = arith.constant 0 : index
      %c0_28 = arith.constant 0 : index
      %50 = vector.load %arg5[%c0_27, %c0_28] : memref<8x1xf32, #tpu.memory_space<vmem>>, vector<8x1xf32>
      tpu.vector_store %arg5[%c0_27, %c0_28], %49 {strides = array<i32>} : memref<8x1xf32, #tpu.memory_space<vmem>>, vector<8x1xf32>,
    } else {
    }
    return
  }
  func.func @transform_0(%arg0: i32, %arg1: i32) -> (i32, i32) {
    %c0_i32 = arith.constant 0 : i32
    %c0_i32_0 = arith.constant 0 : i32
    return %arg0, %c0_i32 : i32, i32
  }
  func.func @transform_1(%arg0: i32, %arg1: i32) -> (i32, i32) {
    %c0_i32 = arith.constant 0 : i32
    %c0_i32_0 = arith.constant 0 : i32
    return %arg1, %c0_i32 : i32, i32
  }
  func.func @transform_2(%arg0: i32, %arg1: i32) -> (i32, i32) {
    %c0_i32 = arith.constant 0 : i32
    %c0_i32_0 = arith.constant 0 : i32
    return %arg0, %c0_i32 : i32, i32
  }
  func.func @transform_3(%arg0: i32, %arg1: i32) -> (i32, i32) {
    %c0_i32 = arith.constant 0 : i32
    %c0_i32_0 = arith.constant 0 : i32
    return %arg0, %c0_i32 : i32, i32
  }
}

</mosaic_0001>

<bundles_post_ra>
// kernel: tpu_custom_call.1
= control target key start
LH: loop header
LB: loop body
LE: loop exit
PB: predicated region body
PF: predicated region fallthrough
CT: control target
= control target key end

     0   :  { %8 = vsyncpa [#allocation6], 0  ;;  %s354_s0 = inlined_call_operand.hbm [shape: f32[8,32], index: 0, kind: input, shape index: {}]   ;;  %s355_s1 = inlined_call_operand.hbm [shape: f32[8,32], index: 1, kind: input, shape index: {}]   ;;  %s356_s2 = inlined_call_operand.hbm [shape: f32[8,32], index: 2, kind: input, shape index: {}]   ;;  %s357_s3 = inlined_call_operand.vmem [shape: f32[8,1], index: 3, kind: output, shape index: {}]  }
   0x1   :  { %9 = vsyncpa [#allocation8], 0  ;;  %s301_s12 = smov [#allocation7]   ;;  %s302_s14 = smov [#allocation5]  }
   0x2   :  { %s26_s13 = sshll.u32 %s301_s12, 4  ;;  %s16_s15 = sshll.u32 %s302_s14, 4  ;;  %s27_s13 = int_to_ptr.vmem [resolvable:$true] %s26_s13  ;;  %s17_s15 = int_to_ptr.vmem [resolvable:$true] %s16_s15 }
   0x3   :  { %s245_s16 = scalar_lea.vmem %s27_s13, 128  ;;  %p250_p1 = scmp.lt.s32.totalorder %s27_s13, %s27_s13 }
   0x4   :  { %p246_p0 = scmp.ne.s32.totalorder %s27_s13, %s245_s16  ;;  %p251_p2 = scmp.lt.s32.totalorder %s245_s16, %s245_s16 }
   0x6   :  { %p252_p3 = por %p251_p2, %p250_p1 }
   0x8   :  { %p253_p4 = pnand %p252_p3, %p246_p0 }
   0xa   :  { %256 = shalt.err (!%p253_p4)
}
   0xb   :  { %29 = dma.hbm_to_vmem [thread:$0]  %s355_s1, 128, %s27_s13, [#allocation8]  }
   0xc   :  { %s265_s19 = scalar_lea.vmem %s17_s15, 128  ;;  %p270_p6 = scmp.lt.s32.totalorder %s17_s15, %s17_s15 }
   0xd   :  { %p266_p5 = scmp.ne.s32.totalorder %s17_s15, %s265_s19  ;;  %p271_p7 = scmp.lt.s32.totalorder %s265_s19, %s265_s19 }
   0xf   :  { %p272_p8 = por %p271_p7, %p270_p6 }
  0x11   :  { %p273_p9 = pnand %p272_p8, %p266_p5 }
  0x13   :  { %276 = shalt.err (!%p273_p9)
}
  0x14   :  { %19 = dma.hbm_to_vmem [thread:$0]  %s354_s0, 128, %s17_s15, [#allocation6]  }
  0x15   :  { %s303_s22 = smov [#allocation9]  }
  0x16   :  { %s36_s23 = sshll.u32 %s303_s22, 4  ;;  %s37_s23 = int_to_ptr.vmem [resolvable:$true] %s36_s23 }
  0x17   :  { %s285_s24 = scalar_lea.vmem %s37_s23, 128  ;;  %p290_p11 = scmp.lt.s32.totalorder %s37_s23, %s37_s23 }
  0x18   :  { %p286_p10 = scmp.ne.s32.totalorder %s37_s23, %s285_s24  ;;  %p291_p12 = scmp.lt.s32.totalorder %s285_s24, %s285_s24 }
  0x1a   :  { %p292_p13 = por %p291_p12, %p290_p11 }
  0x1c   :  { %p293_p0 = pnand %p292_p13, %p286_p10 }
  0x1e   :  { %296 = shalt.err (!%p293_p0)
}
  0x1f   :  { %39 = dma.hbm_to_vmem [thread:$0]  %s356_s2, 128, %s37_s23, [#allocation8]  }
  0x20   :  { %297 = dma.done.wait [#allocation6], 128  }
  0x21   :  { %298 = vsyncadd [#allocation6], 4294967168 }
  0x22   :  { %299 = dma.done.wait [#allocation8], 256  }
  0x23   :  { %300 = vsyncadd [#allocation8], 4294967040  ;;  %vm51_vm0 = vcmask 261120   ;;  %v79_v0 = vld [vmem:[#allocation7] sm:$0xff]  ;;  %v49_v1 = vld [vmem:[#allocation5] sm:$0xff]  ;;  %vm62_vm1 = vcmask 7168  }
  0x24   :  { %v80_v2 = vmul.f32 %v79_v0, %v79_v0  ;;  %v50_v3 = vmul.f32 %v49_v1, %v49_v1  ;;  %v65_v4 = vld [vmem:[#allocation9] sm:$0xff]  ;;  %v304_v9 = vmov 0.0   ;;  %vm305_vm2 = vmmov 0  }
  0x25   :  { %v66_v7 = vmul.f32 %v65_v4, %v65_v4  ;;  %64 = vst.msk [vmem:[#allocation3] sm:$0xff] %vm62_vm1, %v304_v9  ;;  %211 = vmatprep.subr.mxu0 %v304_v9  ;;  %213 = vmatprep.mubr.msk.f32.mxu0 %vm305_vm2, %v304_v9  ;;  %v306_v19 = vmov -inf   ;;  %vm165_vm3 = vcmask 64512   ;;  %v307_v23 = vmov 0  }
  0x26   :  { %v81_v5 = vsel %vm51_vm0, %v80_v2, 0.0  ;;  %v52_v6 = vsel %vm51_vm0, %v50_v3, 0.0  ;;  %63 = vst.msk [vmem:[#allocation2] sm:$0xff] %vm62_vm1, %v306_v19  ;;  %223 = vset.pattern.permute.xlu1 %v307_v23  ;;  %224 = vset.pattern.permute.xlu0 %v307_v23 }
  0x27   :  { %82 = vadd.xlane.f32.xlu0 %v81_v5  ;;  %v67_v8 = vsel %vm51_vm0, %v66_v7, 0.0 }
  0x2b   :  { %53 = vadd.xlane.f32.xlu0 %v52_v6 }
  0x2c   :  { %v170_v41 = vld [vmem:[#allocation3] sm:$0xff] }
  0x2d   :  { %v164_v24 = vld [vmem:[#allocation2] sm:$0xff] }
  0x2f   :  { %68 = vadd.xlane.f32.xlu0 %v67_v8 }
  0xb0   :  { %v83_v10 = vpop.xlane.xlu0 %82 }
  0xb1   :  { %v84_v11 = vadd.f32 1e-12, %v83_v10 }
  0xb3   :  { %225 = vrsqrt.f32 %v84_v11 }
  0xb4   :  { %v54_v12 = vpop.xlane.xlu0 %53 }
  0xb5   :  { %v55_v13 = vadd.f32 1e-12, %v54_v12 }
  0xb7   :  { %227 = vrsqrt.f32 %v55_v13 }
  0xb8   :  { %v69_v28 = vpop.xlane.xlu0 %68 }
  0xb9   :  { %v70_v29 = vadd.f32 1e-12, %v69_v28 }
  0xbb   :  { %229 = vrsqrt.f32 %v70_v29 }
  0xc0   :  { %v226_v14 = vpop.eup %225 }
  0xc1   :  { %v86_v15 = vmul.f32 %v226_v14, %v79_v0 }
  0xc3   :  { %212 = vmatpush3.xpose.msk.msra.mxu0 %vm51_vm0, %v86_v15 }
  0xc4   :  { %v228_v16 = vpop.eup %227 }
  0xc5   :  { %v57_v17 = vmul.f32 %v228_v16, %v49_v1 }
  0xc7   :  { %v87_v18 = vmul.f32 20.0, %v57_v17 }
  0xc8   :  { %v230_v33 = vpop.eup %229 }
  0xc9   :  { %214 = vmatmul.mubr.msk.f32.vlgmr.msra.gmra.mxu0 %vm51_vm0, %v87_v18  ;;  %v72_v34 = vmul.f32 %v230_v33, %v65_v4 }
  0xcb   :  { %v73_v37 = vmul.f32 %v72_v34, %v57_v17 }
  0xcd   :  { %v74_v38 = vsel %vm51_vm0, %v73_v37, 0.0 }
 0x189   :  { %v160_v20 = vpop.f32.mrf.mxu0 }
 0x18a   :  { %v166_v21 = vsel %vm165_vm3, %v160_v20, -inf }
 0x18b   :  { %167 = vmax.xlane.f32.xlu1 %v166_v21  ;;  %v215_v22 = vpop.f32.mrf.mxu0 }
 0x214   :  { %v168_v25 = vpop.xlane.xlu1 %167 }
 0x215   :  { %v169_v26 = vmax.f32 %v164_v24, %v168_v25 }
 0x217   :  { %v171_v27 = vsub.f32 %v164_v24, %v169_v26  ;;  %189 = vst.msk [vmem:[#allocation2] sm:$0xff] %vm62_vm1, %v169_v26  ;;  %177 = vperm.xlu1 %223, %v169_v26  }
 0x219   :  { %v172_v39 = vmul.f32 1.442695, %v171_v27 }
 0x21e   :  { %v193_v50 = vld [vmem:[#allocation2] sm:$0xff] }
 0x292   :  { %v178_v30 = vpop.permute.xlu1 %177 }
 0x293   :  { %v180_v31 = vsub.f32 %v160_v20, %v178_v30 }
 0x295   :  { %v181_v32 = vmul.f32 1.442695, %v180_v31 }
 0x297   :  { %231 = vpow2.f32 %v181_v32 }
 0x298   :  { %233 = vpow2.f32 %v172_v39 }
 0x2a4   :  { %v232_v35 = vpop.eup %231 }
 0x2a5   :  { %v183_v36 = vsel %vm165_vm3, %v232_v35, 0.0  ;;  %v234_v40 = vpop.eup %233 }
 0x2a6   :  { %184 = vadd.xlane.f32.xlu0 %v183_v36  ;;  %v174_v42 = vmul.f32 %v234_v40, %v170_v41 }
 0x2aa   :  { %75 = vadd.xlane.f32.xlu0 %v74_v38 }
 0x32f   :  { %v185_v43 = vpop.xlane.xlu0 %184 }
 0x330   :  { %v186_v44 = vadd.f32 %v185_v43, %v174_v42 }
 0x332   :  { %188 = vst.msk [vmem:[#allocation3] sm:$0xff] %vm62_vm1, %v186_v44 }
 0x333   :  { %v76_v45 = vpop.xlane.xlu0 %75 }
 0x334   :  { %v77_v46 = vmul.f32 20.0, %v76_v45 }
 0x336   :  { %78 = vst.msk [vmem:[#allocation4] sm:$0xff] %vm62_vm1, %v77_v46 }
 0x339   :  { %v194_v47 = vld [vmem:[#allocation3] sm:$0xff] }
 0x33a   :  { %235 = vlog2.f32 %v194_v47 }
 0x33d   :  { %v198_v52 = vld [vmem:[#allocation4] sm:$0xff] }
 0x347   :  { %v236_v48 = vpop.eup %235 }
 0x348   :  { %v196_v49 = vmul.f32 0.6931472, %v236_v48 }
 0x34a   :  { %v197_v51 = vadd.f32 %v196_v49, %v193_v50 }
 0x34c   :  { %v199_v53 = vsub.f32 %v197_v51, %v198_v52 }
 0x34e   :  { %200 = vst.msk [vmem:[%s357_s3] sm:$0xff] %vm62_vm1, %v199_v53 }
 0x34f   :  { %205 = vsyncpa [#allocation6], 1 }
 0x350   :  { %206 = vsyncpa [#allocation8], 1 }

</bundles_post_ra>
